<compile_context>
chip_gen: v7x
topology: tpu7x:2x2x1
jax: 0.10.0
libtpu: 0.0.40
codegen_flags: <defaults>
</compile_context>

<pallas_src>
import jax
import jax.numpy as jnp
from jax.experimental import pallas as pl
from jax.experimental.pallas import tpu as pltpu


def _vq_kernel(cbm2_ref, cbsqr_ref, x_ref, idx_ref, minv_ref):
    """One (n, hw-tile, K-chunk) grid step of the VQ argmin.

    cbm2_ref:  (TK, D)  chunk of -2 * codebook                  (matmul dtype)
    cbsqr_ref: (TK, 1)  chunk of per-code squared norms          (f32)
    x_ref:     (D, TM)  channel-major activation tile            (matmul dtype)
    idx_ref:   (1, TM)  int32 nearest-code index (output block, resident over K)
    minv_ref:  (1, TM)  f32 running minimum distance             (VMEM scratch)
    """
    k_step = pl.program_id(2)
    tile_k = cbm2_ref.shape[0]

    @pl.when(k_step == 0)
    def _():
        minv_ref[...] = jnp.full_like(minv_ref, jnp.inf)
        idx_ref[...] = jnp.zeros_like(idx_ref)

    # Partial distances for this code chunk: ||c||^2 - 2 <c, x>.
    # (||x||^2 is constant along K so it cannot change the argmin; omitted.)
    d = jnp.dot(cbm2_ref[...], x_ref[...], preferred_element_type=jnp.float32)
    d = d + cbsqr_ref[...]                                        # (TK, TM) f32

    # Sublane-direction min + first-index argmin (ties -> lowest index, like torch.min).
    local_min = jnp.min(d, axis=0, keepdims=True)                 # (1, TM)
    k_iota = jax.lax.broadcasted_iota(jnp.int32, d.shape, 0)      # (TK, TM)
    hit = jnp.where(d == local_min, k_iota, jnp.iinfo(jnp.int32).max)
    local_arg = jnp.min(hit, axis=0, keepdims=True) + k_step * tile_k   # (1, TM)

    # Fold into running (min, argmin); strict '<' keeps the earlier chunk on exact ties.
    better = local_min < minv_ref[...]
    minv_ref[...] = jnp.where(better, local_min, minv_ref[...])
    idx_ref[...] = jnp.where(better, local_arg, idx_ref[...])


def _largest_aligned_divisor(n, cap, align):
    """Largest multiple of `align` that divides n and is <= cap (0 if none)."""
    d = (min(cap, n) // align) * align
    while d >= align:
        if n % d == 0:
            return d
        d -= align
    return 0


def vq_indices_chw(x_chw, codebook, *, max_tile_hw=8192, max_tile_k=2048,
                   slab_budget_bytes=8 * 1024 * 1024):
    """x_chw: (N, D, HW) channel-major activations; codebook: (K, D).

    Returns (N, HW) int32 nearest-codebook indices.
    """
    N, D, HW = x_chw.shape
    K, Dc = codebook.shape
    assert D == Dc

    # --- codebook chunking over K (streamed as the innermost grid axis) ---
    if K <= max_tile_k:
        tile_k = K
    else:
        tile_k = _largest_aligned_divisor(K, max_tile_k, 8) or K
    num_k = K // tile_k

    # --- spatial tiling over HW (lane axis); no padding: tiles divide HW exactly ---
    slab_cap = max(128, slab_budget_bytes // (4 * tile_k))
    cap = min(max_tile_hw, slab_cap)
    if HW % 128 == 0:
        tile_hw = _largest_aligned_divisor(HW, min(cap, HW), 128) or HW
    else:
        # Non-lane-aligned spatial extent: use the full dim as one tile.
        # TODO(synk): for large unaligned HW, a masked ragged last tile would be better.
        tile_hw = HW
    num_hw = HW // tile_hw

    # Hoist all codebook-side compute out of the kernel; keep matmul dtype of the input.
    mm_dtype = x_chw.dtype
    cb32 = codebook.astype(jnp.float32)
    cbm2 = (-2.0 * cb32).astype(mm_dtype)                       # (K, D)
    cbsqr = jnp.sum(cb32 * cb32, axis=1, keepdims=True)          # (K, 1) f32

    itemsize = jnp.dtype(mm_dtype).itemsize
    vmem_est = (2 * tile_k * D * itemsize        # codebook chunk (double-buffered)
                + 2 * tile_k * 4                 # code norms
                + 2 * D * tile_hw * itemsize     # x tile (double-buffered)
                + 2 * tile_hw * 4                # output index block
                + tile_hw * 4                    # running-min scratch
                + 2 * tile_k * tile_hw * 4)      # distance slab + temporaries
    vmem_limit = int(min(64 * 1024 * 1024, max(32 * 1024 * 1024, 2 * vmem_est)))

    grid = (N, num_hw, num_k)
    idx = pl.pallas_call(
        _vq_kernel,
        out_shape=jax.ShapeDtypeStruct((N, 1, HW), jnp.int32),
        grid_spec=pltpu.PrefetchScalarGridSpec(
            num_scalar_prefetch=0,
            grid=grid,
            in_specs=[
                pl.BlockSpec((tile_k, D), lambda n, j, k: (k, 0)),       # -2*codebook chunk
                pl.BlockSpec((tile_k, 1), lambda n, j, k: (k, 0)),       # ||c||^2 chunk
                pl.BlockSpec((None, D, tile_hw), lambda n, j, k: (n, 0, j)),  # x tile
            ],
            out_specs=pl.BlockSpec((None, 1, tile_hw), lambda n, j, k: (n, 0, j)),
            scratch_shapes=[pltpu.VMEM((1, tile_hw), jnp.float32)],
        ),
        compiler_params=pltpu.CompilerParams(
            dimension_semantics=("parallel", "parallel", "arbitrary"),
            vmem_limit_bytes=vmem_limit,
        ),
    )(cbm2, cbsqr, x_chw)

    return idx.reshape(N, HW)


class VQEmbedding:
    """JAX/Pallas port of the PyTorch VQEmbedding module's forward pass."""

    def __init__(self, K, D, key):
        self.K = K
        self.D = D
        # nn.Embedding(K, D).weight.data.uniform_(-1/K, 1/K), deterministic init.
        self.embedding_weight = jax.random.uniform(
            key, (K, D), dtype=jnp.float32, minval=-1.0 / K, maxval=1.0 / K
        )

    def forward(self, z_e_x):
        # z_e_x: (N, C=D, H, W) NCHW, as produced by the conv encoder.
        N, C, H, W = z_e_x.shape
        assert C == self.D
        # Channel-major reshape is free on NCHW layout (no transpose / extra HBM pass).
        x_chw = z_e_x.reshape(N, C, H * W)
        idx = vq_indices_chw(x_chw, self.embedding_weight)       # (N, H*W) int32
        return idx.reshape(N, H, W)

    # TODO(synk): straight_through (code gather + straight-through-estimator backward)
    # is not implemented; only the forward argmin (VectorQuantization) is ported.


def _check_against_reference(z_e_x, codebook, kernel_idx, rtol=1e-4):
    """PyTorch-style full-distance reference; allows FP near-tie index flips."""
    N, C, H, W = z_e_x.shape
    z = jnp.transpose(z_e_x, (0, 2, 3, 1)).reshape(-1, C).astype(jnp.float32)
    cb = codebook.astype(jnp.float32)
    dist = (jnp.sum(z * z, axis=1, keepdims=True)
            + jnp.sum(cb * cb, axis=1)[None, :]
            - 2.0 * z @ cb.T)
    ref_idx = jnp.argmin(dist, axis=1).astype(jnp.int32)
    ker_idx = kernel_idx.reshape(-1)
    rows = jnp.arange(z.shape[0])
    d_ref = dist[rows, ref_idx]
    d_ker = dist[rows, ker_idx]
    exact = ker_idx == ref_idx
    near_tie = jnp.abs(d_ker - d_ref) <= rtol * (1.0 + jnp.abs(d_ref))
    assert bool(jnp.all(exact | near_tie)), "VQ indices diverge beyond FP-tie tolerance"
    assert float(jnp.mean(exact.astype(jnp.float32))) > 0.99, "too many index mismatches"


if __name__ == "__main__":
    key = jax.random.PRNGKey(0)
    k_emb, k_x, k_emb2, k_x2 = jax.random.split(key, 4)

    # Small NCHW input consistent with a VQ-VAE encoder output.
    K, D = 128, 32
    N, H, W = 4, 8, 8
    module = VQEmbedding(K, D, k_emb)
    z_e_x = jax.random.normal(k_x, (N, D, H, W), dtype=jnp.float32)

    latents = jax.block_until_ready(module.forward(z_e_x))
    assert latents.shape == (N, H, W)
    assert latents.dtype == jnp.int32
    _check_against_reference(z_e_x, module.embedding_weight, latents)

    # Exercise the K-streaming path (multiple codebook chunks along the k grid axis).
    K2, D2 = 256, 32
    N2, H2, W2 = 2, 4, 4
    cb2 = jax.random.uniform(k_emb2, (K2, D2), jnp.float32, minval=-1.0 / K2, maxval=1.0 / K2)
    z2 = jax.random.normal(k_x2, (N2, D2, H2, W2), dtype=jnp.float32)
    idx2 = jax.block_until_ready(
        vq_indices_chw(z2.reshape(N2, D2, H2 * W2), cb2, max_tile_k=64))
    _check_against_reference(z2, cb2, idx2.reshape(N2, H2, W2))

    print("KERNEL_OK")
</pallas_src>

<mosaic_0001>
module attributes {stable_mosaic.version = 11 : i64} {
  func.func @_vq_kernel(%arg0: i32, %arg1: i32, %arg2: i32, %arg3: memref<128x32xf32, #tpu.memory_space<vmem>>, %arg4: memref<128x1xf32, #tpu.memory_space<vmem>>, %arg5: memref<1x32x64xf32, #tpu.memory_space<vmem>>, %arg6: memref<1x1x64xi32, #tpu.memory_space<vmem>>, %arg7: memref<1x64xf32, #tpu.memory_space<vmem>>) attributes {dimension_semantics = [#tpu.dimension_semantics<parallel>, #tpu.dimension_semantics<parallel>, #tpu.dimension_semantics<arbitrary>], iteration_bounds = array<i64: 4, 1, 1>, scalar_prefetch = 0 : i64, scratch_operands = 1 : i64, tpu.core_type = #tpu.core_type<tc>, window_params = [{transform_indices = @transform_0, window_bounds = array<i64: 128, 32>}, {transform_indices = @transform_1, window_bounds = array<i64: 128, 1>}, {transform_indices = @transform_2, window_bounds = array<i64: 1, 32, 64>}, {transform_indices = @transform_3, window_bounds = array<i64: 1, 1, 64>}]} {
    %c0_i32 = arith.constant 0 : i32
    %0 = arith.cmpi eq, %arg2, %c0_i32 : i32
    %1 = arith.extui %0 : i1 to i32
    %c0_i32_0 = arith.constant 0 : i32
    %2 = arith.cmpi ne, %1, %c0_i32_0 : i32
    scf.if %2 {
      %cst_21 = arith.constant 0x7F800000 : f32
      %33 = vector.broadcast %cst_21 : f32 to vector<1x64xf32>
      %c0_22 = arith.constant 0 : index
      %c0_23 = arith.constant 0 : index
      %34 = vector.load %arg7[%c0_22, %c0_23] : memref<1x64xf32, #tpu.memory_space<vmem>>, vector<1x64xf32>
      tpu.vector_store %arg7[%c0_22, %c0_23], %33 {strides = array<i32>} : memref<1x64xf32, #tpu.memory_space<vmem>>, vector<1x64xf32>,
      %c0_i32_24 = arith.constant 0 : i32
      %35 = vector.broadcast %c0_i32_24 : i32 to vector<1x64xi32>
      %c0_25 = arith.constant 0 : index
      %c0_26 = arith.constant 0 : index
      %c0_27 = arith.constant 0 : index
      %36 = vector.load %arg6[%c0_25, %c0_26, %c0_27] : memref<1x1x64xi32, #tpu.memory_space<vmem>>, vector<1x1x64xi32>
      %37 = vector.shape_cast %36 : vector<1x1x64xi32> to vector<1x64xi32>
      %38 = vector.shape_cast %35 : vector<1x64xi32> to vector<1x1x64xi32>
      tpu.vector_store %arg6[%c0_25, %c0_26, %c0_27], %38 {strides = array<i32>} : memref<1x1x64xi32, #tpu.memory_space<vmem>>, vector<1x1x64xi32>,
    } else {
    }
    %c0 = arith.constant 0 : index
    %c0_1 = arith.constant 0 : index
    %3 = vector.load %arg3[%c0, %c0_1] : memref<128x32xf32, #tpu.memory_space<vmem>>, vector<128x32xf32>
    %c0_2 = arith.constant 0 : index
    %c0_3 = arith.constant 0 : index
    %c0_4 = arith.constant 0 : index
    %4 = vector.load %arg5[%c0_2, %c0_3, %c0_4] : memref<1x32x64xf32, #tpu.memory_space<vmem>>, vector<1x32x64xf32>
    %5 = vector.shape_cast %4 : vector<1x32x64xf32> to vector<32x64xf32>
    %cst = arith.constant dense<0.000000e+00> : vector<128x64xf32>
    %6 = tpu.matmul %3, %5, %cst {dimension_numbers = #tpu.dot_dimension_numbers<[1], [0], [0], [1], [0, 0, 1, 1], [], []>} : vector<128x32xf32>, vector<32x64xf32>, vector<128x64xf32> -> vector<128x64xf32>
    %c0_5 = arith.constant 0 : index
    %c0_6 = arith.constant 0 : index
    %7 = vector.load %arg4[%c0_5, %c0_6] : memref<128x1xf32, #tpu.memory_space<vmem>>, vector<128x1xf32>
    %8 = vector.broadcast %7 : vector<128x1xf32> to vector<128x64xf32>
    %9 = arith.addf %6, %8 : vector<128x64xf32>
    %cst_7 = arith.constant dense<0x7F800000> : vector<64xf32>
    %10 = vector.multi_reduction <minimumf>, %9, %cst_7 [0] : vector<128x64xf32> to vector<64xf32>
    %11 = vector.shape_cast %10 : vector<64xf32> to vector<1x64xf32>
    %12 = tpu.iota {dimensions = array<i32: 0>} : vector<128x64xi32>
    %13 = vector.broadcast %11 : vector<1x64xf32> to vector<128x64xf32>
    %14 = arith.cmpf oeq, %9, %13 : vector<128x64xf32>
    %c2147483647_i32 = arith.constant 2147483647 : i32
    %15 = vector.broadcast %c2147483647_i32 : i32 to vector<128x64xi32>
    %16 = arith.select %14, %12, %15 : vector<128x64xi1>, vector<128x64xi32>
    %cst_8 = arith.constant dense<2147483647> : vector<64xi32>
    %17 = vector.multi_reduction <minsi>, %16, %cst_8 [0] : vector<128x64xi32> to vector<64xi32>
    %18 = vector.shape_cast %17 : vector<64xi32> to vector<1x64xi32>
    %c128_i32 = arith.constant 128 : i32
    %19 = arith.muli %arg2, %c128_i32 : i32
    %20 = vector.broadcast %19 : i32 to vector<1x64xi32>
    %21 = arith.addi %18, %20 : vector<1x64xi32>
    %c0_9 = arith.constant 0 : index
    %c0_10 = arith.constant 0 : index
    %22 = vector.load %arg7[%c0_9, %c0_10] : memref<1x64xf32, #tpu.memory_space<vmem>>, vector<1x64xf32>
    %23 = arith.cmpf olt, %11, %22 : vector<1x64xf32>
    %c0_11 = arith.constant 0 : index
    %c0_12 = arith.constant 0 : index
    %24 = vector.load %arg7[%c0_11, %c0_12] : memref<1x64xf32, #tpu.memory_space<vmem>>, vector<1x64xf32>
    %25 = arith.select %23, %11, %24 : vector<1x64xi1>, vector<1x64xf32>
    %c0_13 = arith.constant 0 : index
    %c0_14 = arith.constant 0 : index
    %26 = vector.load %arg7[%c0_13, %c0_14] : memref<1x64xf32, #tpu.memory_space<vmem>>, vector<1x64xf32>
    tpu.vector_store %arg7[%c0_13, %c0_14], %25 {strides = array<i32>} : memref<1x64xf32, #tpu.memory_space<vmem>>, vector<1x64xf32>,
    %c0_15 = arith.constant 0 : index
    %c0_16 = arith.constant 0 : index
    %c0_17 = arith.constant 0 : index
    %27 = vector.load %arg6[%c0_15, %c0_16, %c0_17] : memref<1x1x64xi32, #tpu.memory_space<vmem>>, vector<1x1x64xi32>
    %28 = vector.shape_cast %27 : vector<1x1x64xi32> to vector<1x64xi32>
    %29 = arith.select %23, %21, %28 : vector<1x64xi1>, vector<1x64xi32>
    %c0_18 = arith.constant 0 : index
    %c0_19 = arith.constant 0 : index
    %c0_20 = arith.constant 0 : index
    %30 = vector.load %arg6[%c0_18, %c0_19, %c0_20] : memref<1x1x64xi32, #tpu.memory_space<vmem>>, vector<1x1x64xi32>
    %31 = vector.shape_cast %30 : vector<1x1x64xi32> to vector<1x64xi32>
    %32 = vector.shape_cast %29 : vector<1x64xi32> to vector<1x1x64xi32>
    tpu.vector_store %arg6[%c0_18, %c0_19, %c0_20], %32 {strides = array<i32>} : memref<1x1x64xi32, #tpu.memory_space<vmem>>, vector<1x1x64xi32>,
    return
  }
  func.func @transform_0(%arg0: i32, %arg1: i32, %arg2: i32) -> (i32, i32) {
    %c0_i32 = arith.constant 0 : i32
    %c0_i32_0 = arith.constant 0 : i32
    return %arg2, %c0_i32 : i32, i32
  }
  func.func @transform_1(%arg0: i32, %arg1: i32, %arg2: i32) -> (i32, i32) {
    %c0_i32 = arith.constant 0 : i32
    %c0_i32_0 = arith.constant 0 : i32
    return %arg2, %c0_i32 : i32, i32
  }
  func.func @transform_2(%arg0: i32, %arg1: i32, %arg2: i32) -> (i32, i32, i32) {
    %c0_i32 = arith.constant 0 : i32
    %c0_i32_0 = arith.constant 0 : i32
    return %arg0, %c0_i32, %arg1 : i32, i32, i32
  }
  func.func @transform_3(%arg0: i32, %arg1: i32, %arg2: i32) -> (i32, i32, i32) {
    %c0_i32 = arith.constant 0 : i32
    %c0_i32_0 = arith.constant 0 : i32
    return %arg0, %c0_i32, %arg1 : i32, i32, i32
  }
}

</mosaic_0001>

<bundles_post_ra>
// kernel: tpu_custom_call.1
= control target key start
LH: loop header
LB: loop body
LE: loop exit
PB: predicated region body
PF: predicated region fallthrough
CT: control target
= control target key end

     0   :  { %8 = vsyncpa [#allocation4], 0  ;;  %s1498_s0 = inlined_call_operand.vmem [shape: f32[128,32], index: 0, kind: input, shape index: {}]   ;;  %s1499_s1 = inlined_call_operand.vmem [shape: f32[128,1], index: 1, kind: input, shape index: {}]   ;;  %s1500_s2 = inlined_call_operand.vmem [shape: f32[4,32,64], index: 2, kind: input, shape index: {}]   ;;  %s1501_s3 = inlined_call_operand.hbm [shape: s32[4,1,64], index: 3, kind: output, shape index: {}]  }
   0x1   :  { %10 = vsyncpa [#allocation4 + $0x1], 0  ;;  %s1086_s12 = smov 0   ;;  %s1088_s13 = smov 0  }
   0x2   :  { %s1090_s14 = smov 0   ;;  %s1092_s15 = smov 0  }
   0x3   :  { %s1094_s16 = smov 0   ;;  %s1096_s17 = smov 0  }
   0x4 LB: > { %s831_s18 = sadd.s32 4294967295, %s1061_s17   ;;  %s832_s19 = sadd.s32 4294967294, %s1061_s17   ;;  %s1061_s17 = sphi %s1096_s17, %s16_s17   ;;  %s1057_s16 = sphi %s1094_s16, %s1528_s16   ;;  %s1053_s15 = sphi %s1092_s15, %s1527_s15   ;;  %s1049_s14 = sphi %s1090_s14, %s1526_s14   ;;  %s1045_s13 = sphi %s1088_s13, %s1525_s13   ;;  %s1041_s12 = sphi %s1086_s12, %s1524_s12  }
   0x5   : > { %s35_s20 = sadd.s32 1, %s1057_s16  ;;  %s124_s21 = sadd.s32 1, %s1049_s14 }
   0x6   : > { %p37_p0 = scmp.ge.s32.totalorder %s35_s20, 4  ;;  %p134_p1 = scmp.ne.s32.totalorder %s1049_s14, %s1045_s13 }
   0x7   : > { %p135_p2 = scmp.eq.s32.totalorder %s831_s18, 3  ;;  %p140_p3 = scmp.ne.s32.totalorder %s1045_s13, %s1041_s12 }
   0x8   : > { %s1530_s20 = smov (%p37_p0, %s35_s20), 0  ;;  %p141_p5 = scmp.eq.s32.totalorder %s832_s19, 3 }
   0x9   : > { %p1126_p4 = por %p135_p2, %p134_p1  ;;  %s119_s23 = ssub.s32 %s1057_s16, %s1530_s20 }
   0xa   : > { %p837_p6 = scmp.ge.s32.totalorder %s1061_s17, 1  ;;  %p122_p7 = scmp.eq.s32.totalorder %s119_s23, 0 }
   0xb   : > { %p1133_p8 = por %p141_p5, %p140_p3  ;;  %p188_p9 = scmp.lt.s32.totalorder %s1061_s17, 5 }
   0xc   : > { %s1139_s25 = scalar_select %p122_p7, %s1049_s14, %s124_s21  }
   0xd   : > { %p189_p10 = pnand %p837_p6, %p188_p9 }
   0xe   : > { %p236_p11 = scmp.lt.s32.totalorder (!%p189_p10), %s1053_s15, 3  ;;  %v251_v0 = vld [vmem:[%s1498_s0] sm:$0xff] (!%p189_p10)  ;;  %vm367_vm0 = vcmask (!%p189_p10), 261120   ;;  %s222_s30 = sand.u32 (!%p189_p10), 1, %s1045_s13   ;;  %vm1503_vm1 = vcmask (!%p189_p10), 516096   ;;  %v1063_v2 = vmov (!%p189_p10), 0  }
   0xf   : > { %192 = sbr.rel (%p189_p10) target bundleno = 345 (0x159), region = 32  ;;  %v259_v1 = vld [vmem:[%s1498_s0 + $0x40] sm:$0xff] (!%p189_p10)  ;;  %888 = vmatprep.mubr.msk.f32.mxu0 (!%p189_p10), %vm367_vm0, %v251_v0  ;;  %982 = vset.pattern.permute.xlu1 (!%p189_p10), %v1063_v2  ;;  %v1064_v3 = vmov (!%p189_p10), inf   ;;  %s1155_s6 = scalar_lea.vmem (!%p189_p10), [#allocation3], %s222_s30  ;;  %v273_v4 = vld [vmem:[%s1499_s1 + $0x10] sm:$0xff] (!%p189_p10)  ;;  %v274_v12 = vld [vmem:[%s1499_s1 + $0x18] sm:$0xff] (!%p189_p10) }
  0x10   : > { %900 = vmatprep.mubr.msk.f32.mxu1 (!%p189_p10), %vm367_vm0, %v259_v1  ;;  %249 = vst.msk [vmem:[#allocation2] sm:$0x1] (!%p189_p10), %vm1503_vm1, %v1064_v3  ;;  %981 = vset.pattern.permute.xlu0 (!%p189_p10), %v1063_v2  ;;  %250 = vst.msk [vmem:[%s1155_s6] sm:$0x1] (!%p189_p10), %vm1503_vm1, %v1063_v2  ;;  %v271_v5 = vld [vmem:[%s1499_s1] sm:$0xff] (!%p189_p10)  ;;  %v272_v13 = vld [vmem:[%s1499_s1 + $0x8] sm:$0xff] (!%p189_p10) }
  0x11   : > { %299 = vperm.xlu1 (!%p189_p10), %982, %v273_v4   ;;  %289 = vperm.xlu0 (!%p189_p10), %981, %v271_v5   ;;  %v276_v14 = vld [vmem:[%s1499_s1 + $0x28] sm:$0xff] (!%p189_p10)  ;;  %v275_v15 = vld [vmem:[%s1499_s1 + $0x20] sm:$0xff] (!%p189_p10)  ;;  %v253_v18 = vld [vmem:[%s1498_s0 + $0x10] sm:$0xff] (!%p189_p10)  ;;  %vm1502_vm2 = vcmask (!%p189_p10), 523264   ;;  %s856_s10 = sshll.u32 (!%p189_p10), %s1053_s15, 4  ;;  %s728_s11 = sshll.u32 (!%p189_p10), %s1155_s6, 4  ;;  %s1446_s11 = int_to_ptr.vmem [resolvable:$true] %s728_s11 }
  0x12   : > { %v252_v16 = vld [vmem:[%s1498_s0 + $0x8] sm:$0xff] (!%p189_p10)  ;;  %v261_v19 = vld [vmem:[%s1498_s0 + $0x50] sm:$0xff] (!%p189_p10)  ;;  %v278_v20 = vld [vmem:[%s1499_s1 + $0x38] sm:$0xff] (!%p189_p10)  ;;  %s1444_s21 = scalar_lea.hbm (!%p189_p10), %s1501_s3, %s856_s10  ;;  %s983_s23 = scalar_lea.vmem (!%p189_p10), %s1446_s11, 16 }
  0x13   : > { %v260_v17 = vld [vmem:[%s1498_s0 + $0x48] sm:$0xff] (!%p189_p10)  ;;  %v277_v21 = vld [vmem:[%s1499_s1 + $0x30] sm:$0xff] (!%p189_p10)  ;;  %v254_v22 = vld [vmem:[%s1498_s0 + $0x18] sm:$0xff] (!%p189_p10)  ;;  %p984_p12 = scmp.ne.s32.totalorder (!%p189_p10), %s1446_s11, %s983_s23  ;;  %s1065_s26 = smov (!%p189_p10), [#allocation3]  }
  0x14   : > { %v262_v23 = vld [vmem:[%s1498_s0 + $0x58] sm:$0xff] (!%p189_p10)  ;;  %v255_v24 = vld [vmem:[%s1498_s0 + $0x20] sm:$0xff] (!%p189_p10)  ;;  %v280_v26 = vld [vmem:[%s1499_s1 + $0x48] sm:$0xff] (!%p189_p10)  ;;  %s987_s27 = sshll.u32 (!%p189_p10), %s1065_s26, 4  ;;  %s988_s27 = int_to_ptr.vmem [resolvable:$false] %s987_s27 }
  0x15   : > { %304 = vperm.xlu1 (!%p189_p10), %982, %v274_v12   ;;  %294 = vperm.xlu0 (!%p189_p10), %981, %v272_v13   ;;  %v263_v25 = vld [vmem:[%s1498_s0 + $0x60] sm:$0xff] (!%p189_p10)  ;;  %v256_v28 = vld [vmem:[%s1498_s0 + $0x28] sm:$0xff] (!%p189_p10)  ;;  %v257_v30 = vld [vmem:[%s1498_s0 + $0x30] sm:$0xff] (!%p189_p10)  ;;  %p985_p13 = pnand (!%p189_p10), %p984_p12, %p1126_p4  ;;  %s989_s28 = scalar_lea.vmem (!%p189_p10), %s988_s27, 32 }
  0x16   : > { %s237_s4 = scalar_select %p236_p11, %s1053_s15, 3  ;;  %v279_v27 = vld [vmem:[%s1499_s1 + $0x40] sm:$0xff]  ;;  %v264_v29 = vld [vmem:[%s1498_s0 + $0x68] sm:$0xff]  ;;  %v265_v31 = vld [vmem:[%s1498_s0 + $0x70] sm:$0xff] }
  0x17   : > { %v282_v32 = vld [vmem:[%s1499_s1 + $0x58] sm:$0xff]  ;;  %v281_v33 = vld [vmem:[%s1499_s1 + $0x50] sm:$0xff]  ;;  %v284_v36 = vld [vmem:[%s1499_s1 + $0x68] sm:$0xff]  ;;  %s715_s15 = scalar_lea.sflag [#allocation4], %s222_s30  ;;  %p986_p0 = pneg %p985_p13 }
  0x18   : > { %s859_s5 = sshll.u32 %s237_s4, 5  ;;  %v258_v34 = vld [vmem:[%s1498_s0 + $0x38] sm:$0xff]  ;;  %v283_v37 = vld [vmem:[%s1499_s1 + $0x60] sm:$0xff]  ;;  %v285_v39 = vld [vmem:[%s1499_s1 + $0x70] sm:$0xff]  ;;  %p990_p1 = scmp.lt.s32.totalorder %s1446_s11, %s988_s27 }
  0x19   : > { %s243_s9 = scalar_lea.vmem %s1500_s2, %s859_s5  ;;  %314 = vperm.xlu1 %982, %v276_v14   ;;  %309 = vperm.xlu0 %981, %v275_v15   ;;  %v266_v35 = vld [vmem:[%s1498_s0 + $0x78] sm:$0xff]  ;;  %p991_p2 = scmp.lt.s32.totalorder %s989_s28, %s983_s23 }
  0x1a   : > { %v267_v6 = vld [vmem:[%s243_s9] sm:$0xff]  ;;  %v268_v7 = vld [vmem:[%s243_s9 + $0x8] sm:$0xff]  ;;  %v269_v8 = vld [vmem:[%s243_s9 + $0x10] sm:$0xff] }
  0x1b   : > { %v912_v9 = vpack.c.bf16 %v268_v7, %v267_v6  ;;  %v270_v10 = vld [vmem:[%s243_s9 + $0x18] sm:$0xff]  ;;  %p992_p3 = por %p991_p2, %p990_p1 }
  0x1c   : > { %v916_v11 = vpack.c.bf16 %v270_v10, %v269_v8  ;;  %v286_v38 = vld [vmem:[%s1499_s1 + $0x78] sm:$0xff] }
  0x1d   : > { %913 = vmatprep.subr.bf16.mxu0 %v912_v9  ;;  %920 = vmatprep.subr.bf16.mxu1 %v912_v9  ;;  %p993_p5 = pnand %p992_p3, %p986_p0 }
  0x1e   : > { %915 = vmatpush3.bf16.msra.mxu0 %v912_v9  ;;  %922 = vmatpush3.bf16.msra.mxu1 %v912_v9 }
  0x1f   : > { %917 = vmatprep.subr.bf16.mxu0 %v916_v11  ;;  %921 = vmatprep.subr.bf16.mxu1 %v916_v11 }
  0x20   : > { %324 = vperm.xlu1 %982, %v278_v20   ;;  %319 = vperm.xlu0 %981, %v277_v21  }
  0x22   : > { %919 = vmatpush3.bf16.msra.mxu0 %v916_v11  ;;  %923 = vmatpush3.bf16.msra.mxu1 %v916_v11 }
  0x24   : > { %334 = vperm.xlu1 %982, %v280_v26   ;;  %329 = vperm.xlu0 %981, %v279_v27  }
  0x25   : > { %889 = vmatmul.mubr.msk.f32.vlgmr.msra.gmra.mrb[0].mxu0 %vm367_vm0, %v252_v16  ;;  %901 = vmatmul.mubr.msk.f32.vlgmr.msra.gmra.mrb[0].mxu1 %vm367_vm0, %v260_v17 }
  0x26   : > { %891 = vmatprep.mubr.msk.f32.mxu0 %vm367_vm0, %v253_v18  ;;  %903 = vmatprep.mubr.msk.f32.mxu1 %vm367_vm0, %v261_v19 }
  0x28   : > { %344 = vperm.xlu1 %982, %v282_v32   ;;  %339 = vperm.xlu0 %981, %v281_v33  }
  0x29   : > { %892 = vmatmul.mubr.msk.f32.gmra.mrb[2].mxu0 %vm367_vm0, %v254_v22  ;;  %904 = vmatmul.mubr.msk.f32.gmra.mrb[2].mxu1 %vm367_vm0, %v262_v23 }
  0x2a   : > { %894 = vmatprep.mubr.msk.f32.mxu0 %vm367_vm0, %v255_v24  ;;  %906 = vmatprep.mubr.msk.f32.mxu1 %vm367_vm0, %v263_v25 }
  0x2c   : > { %354 = vperm.xlu1 %982, %v284_v36   ;;  %349 = vperm.xlu0 %981, %v283_v37  }
  0x2d   : > { %895 = vmatmul.mubr.msk.f32.gmra.mrb[4].mxu0 %vm367_vm0, %v256_v28  ;;  %907 = vmatmul.mubr.msk.f32.gmra.mrb[4].mxu1 %vm367_vm0, %v264_v29 }
  0x2e   : > { %897 = vmatprep.mubr.msk.f32.mxu0 %vm367_vm0, %v257_v30  ;;  %909 = vmatprep.mubr.msk.f32.mxu1 %vm367_vm0, %v265_v31 }
  0x30   : > { %364 = vperm.xlu1 %982, %v286_v38   ;;  %359 = vperm.xlu0 %981, %v285_v39  }
  0x31   : > { %898 = vmatmul.mubr.msk.f32.gmra.mrb[6].mxu0 %vm367_vm0, %v258_v34  ;;  %910 = vmatmul.mubr.msk.f32.gmra.mrb[6].mxu1 %vm367_vm0, %v266_v35 }
  0x90   : > { %v300_v40 = vpop.permute.xlu1 %299  ;;  %v290_v41 = vpop.permute.xlu0 %289 }
  0x94   : > { %v305_v42 = vpop.permute.xlu1 %304  ;;  %v295_v43 = vpop.permute.xlu0 %294 }
  0x98   : > { %v315_v44 = vpop.permute.xlu1 %314  ;;  %v310_v45 = vpop.permute.xlu0 %309 }
  0x9f   : > { %v325_v46 = vpop.permute.xlu1 %324  ;;  %v320_v47 = vpop.permute.xlu0 %319 }
  0xa3   : > { %v335_v48 = vpop.permute.xlu1 %334  ;;  %v330_v49 = vpop.permute.xlu0 %329 }
  0xa7   : > { %v345_v50 = vpop.permute.xlu1 %344  ;;  %v340_v51 = vpop.permute.xlu0 %339 }
  0xab   : > { %v355_v61 = vpop.permute.xlu1 %354  ;;  %v350_v62 = vpop.permute.xlu0 %349 }
  0xaf   : > { %v365_v28 = vpop.permute.xlu1 %364  ;;  %v360_v33 = vpop.permute.xlu0 %359 }
  0xf8   : > { %v890_v52 = vpop.f32.mrb[0].mxu0  ;;  %v902_v53 = vpop.f32.mrb[0].mxu1 }
  0xf9   : > { %v482_v54 = vpop.f32.mrb[1].mxu0  ;;  %v522_v55 = vpop.f32.mrb[1].mxu1  ;;  %v1266_v60 = vadd.f32 %v890_v52, %v295_v43  ;;  %v1268_v63 = vadd.f32 %v902_v53, %v335_v48 }
  0xfa   : > { %v1270_v0 = vadd.f32 %v482_v54, %v290_v41  ;;  %v1272_v1 = vadd.f32 %v522_v55, %v330_v49  ;;  %v599_v55 = vlaneseq }
  0xfb   : > { %v563_v8 = vsel %vm1502_vm2, %v1266_v60, inf  ;;  %v576_v12 = vsel %vm1502_vm2, %v1268_v63, inf }
  0xfc   : > { %v893_v56 = vpop.f32.mrb[2].mxu0  ;;  %v905_v57 = vpop.f32.mrb[2].mxu1  ;;  %v562_v13 = vsel %vm1502_vm2, %v1270_v0, inf  ;;  %v574_v16 = vsel %vm1502_vm2, %v1272_v1, inf }
  0xfd   : > { %v492_v58 = vpop.f32.mrb[3].mxu0  ;;  %v532_v59 = vpop.f32.mrb[3].mxu1  ;;  %v1274_v4 = vadd.f32 %v893_v56, %v305_v42  ;;  %v1296_v17 = vadd.f32 %v905_v57, %v345_v50 }
  0xfe   : > { %v1280_v9 = vadd.f32 %v492_v58, %v300_v40  ;;  %v1302_v23 = vadd.f32 %v532_v59, %v340_v51  ;;  %v600_v58 = vshrl.u32 %v599_v55, 7 }
  0xff   : > { %v565_v22 = vsel %vm1502_vm2, %v1274_v4, inf  ;;  %v580_v42 = vsel %vm1502_vm2, %v1296_v17, inf }
 0x100   : > { %v896_v2 = vpop.f32.mrb[4].mxu0  ;;  %v908_v3 = vpop.f32.mrb[4].mxu1  ;;  %v564_v29 = vsel %vm1502_vm2, %v1280_v9, inf }
 0x101   : > { %v1276_v5 = vadd.f32 %v896_v2, %v315_v44  ;;  %v502_v6 = vpop.f32.mrb[5].mxu0  ;;  %v542_v7 = vpop.f32.mrb[5].mxu1  ;;  %v1282_v10 = vadd.f32 %v908_v3, %v355_v61  ;;  %v602_v3 = vadd.s32 16, %v600_v58 }
 0x102   : > { %v1284_v11 = vadd.f32 %v502_v6, %v310_v45  ;;  %v1292_v15 = vadd.f32 %v542_v7, %v350_v62  ;;  %v578_v45 = vsel %vm1502_vm2, %v1302_v23, inf  ;;  %v601_v62 = vadd.s32 8, %v600_v58 }
 0x103   : > { %v568_v14 = vsel %vm1502_vm2, %v1276_v5, inf  ;;  %v584_v31 = vsel %vm1502_vm2, %v1282_v10, inf  ;;  %v603_v6 = vadd.s32 24, %v600_v58  ;;  %v604_v7 = vadd.s32 32, %v600_v58 }
 0x104   : > { %v569_v18 = vmin.f32 %v563_v8, %v568_v14  ;;  %v566_v19 = vsel %vm1502_vm2, %v1284_v11, inf  ;;  %v899_v20 = vpop.f32.mrb[6].mxu0  ;;  %v911_v21 = vpop.f32.mrb[6].mxu1  ;;  %v582_v35 = vsel %vm1502_vm2, %v1292_v15, inf  ;;  %v605_v8 = vadd.s32 40, %v600_v58 }
 0x105   : > { %v567_v24 = vmin.f32 %v562_v13, %v566_v19  ;;  %v1304_v25 = vadd.f32 %v899_v20, %v325_v46  ;;  %v512_v26 = vpop.f32.mrb[7].mxu0  ;;  %v552_v27 = vpop.f32.mrb[7].mxu1  ;;  %v1316_v37 = vadd.f32 %v911_v21, %v365_v28  ;;  %v607_v13 = vadd.s32 56, %v600_v58 }
 0x106   : > { %v577_v30 = vmin.f32 %v569_v18, %v576_v12  ;;  %v1310_v32 = vadd.f32 %v512_v26, %v320_v47  ;;  %v1320_v41 = vadd.f32 %v552_v27, %v360_v33  ;;  %v606_v12 = vadd.s32 48, %v600_v58  ;;  %v1348_v27 = vld [vmem:[#allocation2] sm:$0x1] }
 0x107   : > { %v575_v34 = vmin.f32 %v567_v24, %v574_v16  ;;  %v572_v36 = vsel %vm1502_vm2, %v1304_v25, inf  ;;  %v588_v48 = vsel %vm1502_vm2, %v1316_v37, inf  ;;  %v608_v14 = vadd.s32 64, %v600_v58 }
 0x108   : > { %v585_v38 = vmin.f32 %v577_v30, %v584_v31  ;;  %v573_v39 = vmin.f32 %v565_v22, %v572_v36  ;;  %v570_v40 = vsel %vm1502_vm2, %v1310_v32, inf  ;;  %v586_v51 = vsel %vm1502_vm2, %v1320_v41, inf }
 0x109   : > { %v583_v43 = vmin.f32 %v575_v34, %v582_v35  ;;  %v571_v44 = vmin.f32 %v564_v29, %v570_v40  ;;  %v609_v18 = vadd.s32 72, %v600_v58  ;;  %v610_v19 = vadd.s32 80, %v600_v58 }
 0x10a   : > { %v581_v46 = vmin.f32 %v573_v39, %v580_v42  ;;  %v611_v20 = vadd.s32 88, %v600_v58  ;;  %v612_v21 = vadd.s32 96, %v600_v58  ;;  %v613_v22 = vadd.s32 104, %v600_v58 }
 0x10b   : > { %v590_v47 = vmin.f32 %v583_v43, %v585_v38  ;;  %v579_v49 = vmin.f32 %v571_v44, %v578_v45  ;;  %v614_v24 = vadd.s32 112, %v600_v58  ;;  %v615_v26 = vadd.s32 120, %v600_v58 }
 0x10c   : > { %v589_v50 = vmin.f32 %v581_v46, %v588_v48 }
 0x10d   : > { %v587_v52 = vmin.f32 %v579_v49, %v586_v51 }
 0x10f   : > { %v591_v53 = vmin.f32 %v587_v52, %v589_v50 }
 0x111   : > { %v592_v54 = vmin.f32 %v590_v47, %v591_v53 }
 0x113   : > { %v593_v56 = vrot.slane %v592_v54, 4 }
 0x115   : > { %v594_v57 = vmin.f32 %v592_v54, %v593_v56 }
 0x117   : > { %v595_v59 = vrot.slane %v594_v57, 2 }
 0x119   : > { %v596_v61 = vmin.f32 %v594_v57, %v595_v59 }
 0x11b   : > { %v597_v2 = vrot.slane %v596_v61, 1 }
 0x11d   : > { %v1330_v16 = vmin.f32 %v596_v61, %v597_v2 }
 0x11f   : > { %vm616_vm3 = vcmp.eq.f32.partialorder %v1270_v0, %v1330_v16  ;;  %vm617_vm4 = vcmp.eq.f32.partialorder %v1266_v60, %v1330_v16  ;;  %vm618_vm5 = vcmp.eq.f32.partialorder %v1280_v9, %v1330_v16  ;;  %vm619_vm6 = vcmp.eq.f32.partialorder %v1274_v4, %v1330_v16 }
 0x120   : > { %vm620_vm7 = vcmp.eq.f32.partialorder %v1284_v11, %v1330_v16  ;;  %vm621_vm8 = vcmp.eq.f32.partialorder %v1276_v5, %v1330_v16  ;;  %vm622_vm9 = vcmp.eq.f32.partialorder %v1310_v32, %v1330_v16  ;;  %vm623_vm10 = vcmp.eq.f32.partialorder %v1304_v25, %v1330_v16 }
 0x121   : > { %vm624_vm11 = vcmp.eq.f32.partialorder %v1272_v1, %v1330_v16  ;;  %vm625_vm12 = vcmp.eq.f32.partialorder %v1268_v63, %v1330_v16  ;;  %vm626_vm13 = vcmp.eq.f32.partialorder %v1302_v23, %v1330_v16  ;;  %vm627_vm14 = vcmp.eq.f32.partialorder %v1296_v17, %v1330_v16 }
 0x122   : > { %vm628_vm15 = vcmp.eq.f32.partialorder %v1292_v15, %v1330_v16  ;;  %vm630_vm2 = vcmp.eq.f32.partialorder %v1320_v41, %v1330_v16  ;;  %vm631_vm1 = vcmp.eq.f32.partialorder %v1316_v37, %v1330_v16  ;;  %v632_v28 = vsel %vm616_vm3, %v600_v58, 2147483647 }
 0x123   : > { %v633_v29 = vsel %vm617_vm4, %v601_v62, 2147483647  ;;  %v634_v30 = vsel %vm618_vm5, %v602_v3, 2147483647  ;;  %vm707_vm0 = vcmp.lt.f32.partialorder %v1330_v16, %v1348_v27  ;;  %v635_v31 = vsel %vm619_vm6, %v603_v6, 2147483647 }
 0x124   : > { %v636_v0 = vsel %vm620_vm7, %v604_v7, 2147483647  ;;  %v637_v60 = vsel %vm621_vm8, %v605_v8, 2147483647  ;;  %v708_v9 = vsel %vm707_vm0, %v1330_v16, %v1348_v27  ;;  %v638_v33 = vsel %vm622_vm9, %v606_v12, 2147483647 }
 0x125   : > { %v639_v4 = vsel %vm623_vm10, %v607_v13, 2147483647  ;;  %v640_v11 = vsel %vm624_vm11, %v608_v14, 2147483647  ;;  %vm1506_vm3 = vcmask 516096   ;;  %vm1507_vm4 = vcmp.eq.f32.partialorder %v1282_v10, %v1330_v16 }
 0x126   : > { %710 = vst.msk [vmem:[#allocation2] sm:$0x1] %vm1506_vm3, %v708_v9  ;;  %v641_v5 = vsel %vm625_vm12, %v609_v18, 2147483647  ;;  %v642_v34 = vsel %vm626_vm13, %v610_v19, 2147483647 }
 0x127   : > { %v643_v32 = vsel %vm627_vm14, %v611_v20, 2147483647  ;;  %v644_v25 = vsel %vm628_vm15, %v612_v21, 2147483647  ;;  %v645_v1 = vsel %vm1507_vm4, %v613_v22, 2147483647 }
 0x128   : > { %v646_v63 = vsel %vm630_vm2, %v614_v24, 2147483647  ;;  %v647_v23 = vsel %vm631_vm1, %v615_v26, 2147483647  ;;  %vm1508_vm5 = vcmask 523264  }
 0x129   : > { %v648_v35 = vsel %vm1508_vm5, %v632_v28, 2147483647  ;;  %vm1509_vm6 = vmmov %vm1508_vm5  ;;  %v711_v13 = vld [vmem:[%s1155_s6] sm:$0x1] }
 0x12a   : > { %v649_v17 = vsel %vm1509_vm6, %v633_v29, 2147483647  ;;  %vm1510_vm7 = vmmov %vm1508_vm5 }
 0x12b   : > { %v650_v36 = vsel %vm1510_vm7, %v634_v30, 2147483647  ;;  %vm1511_vm8 = vmmov %vm1508_vm5 }
 0x12c   : > { %v651_v15 = vsel %vm1511_vm8, %v635_v31, 2147483647  ;;  %vm1512_vm9 = vmmov %vm1508_vm5 }
 0x12d   : > { %v652_v38 = vsel %vm1512_vm9, %v636_v0, 2147483647  ;;  %vm1513_vm11 = vmmov %vm1508_vm5 }
 0x12e   : > { %vm653_vm10 = vcmp.lt.s32.totalorder %v648_v35, %v652_v38  ;;  %v655_v10 = vsel %vm1513_vm11, %v637_v60, 2147483647  ;;  %vm1514_vm12 = vmmov %vm1508_vm5 }
 0x12f   : > { %v658_v39 = vsel %vm1514_vm12, %v638_v33, 2147483647  ;;  %vm1515_vm2 = vmmov %vm1508_vm5  ;;  %v654_v41 = vsel %vm653_vm10, %v648_v35, %v652_v38  ;;  %vm656_vm13 = vcmp.lt.s32.totalorder %v649_v17, %v655_v10 }
 0x130   : > { %v661_v40 = vsel %vm1515_vm2, %v639_v4, 2147483647  ;;  %vm659_vm1 = vcmp.lt.s32.totalorder %v650_v36, %v658_v39  ;;  %v657_v37 = vsel %vm656_vm13, %v649_v17, %v655_v10  ;;  %vm1516_vm15 = vmmov %vm1515_vm2  ;;  %v682_v54 = vsel %vm1515_vm2, %v646_v63, 2147483647 }
 0x131   : > { %vm662_vm14 = vcmp.lt.s32.totalorder %v651_v15, %v661_v40  ;;  %v660_v42 = vsel %vm659_vm1, %v650_v36, %v658_v39  ;;  %v664_v44 = vsel %vm1516_vm15, %v640_v11, 2147483647  ;;  %vm1517_vm4 = vmmov %vm1515_vm2 }
 0x132   : > { %v663_v43 = vsel %vm662_vm14, %v651_v15, %v661_v40  ;;  %vm665_vm3 = vcmp.lt.s32.totalorder %v654_v41, %v664_v44  ;;  %v667_v45 = vsel %vm1517_vm4, %v641_v5, 2147483647  ;;  %vm1518_vm5 = vmmov %vm1515_vm2 }
 0x133   : > { %v670_v46 = vsel %vm1518_vm5, %v642_v34, 2147483647  ;;  %vm1519_vm6 = vmmov %vm1515_vm2  ;;  %v666_v48 = vsel %vm665_vm3, %v654_v41, %v664_v44  ;;  %vm668_vm7 = vcmp.lt.s32.totalorder %v657_v37, %v667_v45 }
 0x134   : > { %v673_v47 = vsel %vm1519_vm6, %v643_v32, 2147483647  ;;  %vm671_vm8 = vcmp.lt.s32.totalorder %v660_v42, %v670_v46  ;;  %v669_v49 = vsel %vm668_vm7, %v657_v37, %v667_v45  ;;  %vm1520_vm10 = vmmov %vm1515_vm2 }
 0x135   : > { %vm674_vm9 = vcmp.lt.s32.totalorder %v663_v43, %v673_v47  ;;  %v672_v50 = vsel %vm671_vm8, %v660_v42, %v670_v46  ;;  %v676_v52 = vsel %vm1520_vm10, %v644_v25, 2147483647  ;;  %vm1521_vm12 = vmmov %vm1515_vm2 }
 0x136   : > { %v675_v51 = vsel %vm674_vm9, %v663_v43, %v673_v47  ;;  %vm677_vm11 = vcmp.lt.s32.totalorder %v666_v48, %v676_v52  ;;  %v679_v53 = vsel %vm1521_vm12, %v645_v1, 2147483647  ;;  %vm1522_vm13 = vmmov %vm1515_vm2  ;;  %vm683_vm14 = vcmp.lt.s32.totalorder %v672_v50, %v682_v54 }
 0x137   : > { %v685_v55 = vsel %vm1522_vm13, %v647_v23, 2147483647  ;;  %v678_v56 = vsel %vm677_vm11, %v666_v48, %v676_v52  ;;  %vm680_vm1 = vcmp.lt.s32.totalorder %v669_v49, %v679_v53  ;;  %v684_v58 = vsel %vm683_vm14, %v672_v50, %v682_v54 }
 0x138   : > { %vm686_vm15 = vcmp.lt.s32.totalorder %v675_v51, %v685_v55  ;;  %v681_v57 = vsel %vm680_vm1, %v669_v49, %v679_v53  ;;  %vm1523_vm9 = vcmask 516096  }
 0x139   : > { %v687_v59 = vsel %vm686_vm15, %v675_v51, %v685_v55  ;;  %vm688_vm3 = vcmp.lt.s32.totalorder %v678_v56, %v681_v57 }
 0x13a   : > { %vm690_vm4 = vcmp.lt.s32.totalorder %v684_v58, %v687_v59  ;;  %v689_v61 = vsel %vm688_vm3, %v678_v56, %v681_v57 }
 0x13b   : > { %v691_v62 = vsel %vm690_vm4, %v684_v58, %v687_v59 }
 0x13c   : > { %vm692_vm5 = vcmp.lt.s32.totalorder %v689_v61, %v691_v62 }
 0x13d   : > { %v693_v2 = vsel %vm692_vm5, %v689_v61, %v691_v62 }
 0x13e   : > { %v694_v3 = vrot.slane %v693_v2, 4 }
 0x140   : > { %vm695_vm6 = vcmp.lt.s32.totalorder %v693_v2, %v694_v3 }
 0x141   : > { %v696_v6 = vsel %vm695_vm6, %v693_v2, %v694_v3 }
 0x142   : > { %v697_v7 = vrot.slane %v696_v6, 2 }
 0x144   : > { %vm698_vm7 = vcmp.lt.s32.totalorder %v696_v6, %v697_v7 }
 0x145   : > { %v699_v8 = vsel %vm698_vm7, %v696_v6, %v697_v7 }
 0x146   : > { %v700_v12 = vrot.slane %v699_v8, 1 }
 0x148   : > { %vm701_vm8 = vcmp.lt.s32.totalorder %v699_v8, %v700_v12 }
 0x149   : > { %v702_v14 = vsel %vm701_vm8, %v699_v8, %v700_v12 }
 0x14a   : > { %v712_v18 = vsel %vm707_vm0, %v702_v14, %v711_v13 }
 0x14b   : > { %713 = vst.msk [vmem:[%s1155_s6] sm:$0x1] %vm1523_vm9, %v712_v18 }
 0x14c   : > { %996 = shalt.err (!%p993_p5)
}
 0x14d   : > { %s997_s30 = scalar_lea.hbm %s1444_s21, 16  ;;  %s1001_s4 = scalar_lea.hbm %s1501_s3, 64 }
 0x14e   : > { %p998_p6 = scmp.ne.s32.totalorder %s1444_s21, %s997_s30  ;;  %p1002_p10 = scmp.lt.u32.totalorder %s1444_s21, %s1501_s3 }
 0x14f   : > { %p1003_p11 = scmp.lt.u32.totalorder %s1001_s4, %s997_s30  ;;  %p1005_p13 = scmp.lt.u32.totalorder %s997_s30, %s1444_s21 }
 0x150   : > { %p999_p7 = pnand %p998_p6, %p1126_p4 }
 0x151   : > { %p1004_p12 = por %p1003_p11, %p1002_p10 }
 0x152   : > { %p1000_p9 = pneg %p999_p7 }
 0x153   : > { %p1006_p0 = por %p1005_p13, %p1004_p12 }
 0x155   : > { %p1007_p1 = pnand %p1006_p0, %p1000_p9 }
 0x157   : > { %1010 = shalt.err (!%p1007_p1)
}
 0x158   : > { %924 = dma.vmem_to_hbm [thread:$0]  (%p1126_p4), %s1446_s11, 16, %s1444_s21, %s715_s15  }
 0x159 PF: > { %p930_p2 = scmp.ge.s32.totalorder %s1061_s17, 2  ;;  %s740_s8 = sand.u32 1, %s1041_s12  }
 0x15a   : > { %s741_s9 = scalar_lea.sflag [#allocation4], %s740_s8 }
 0x15b   : > { %p927_p3 = pnand %p930_p2, %p1133_p8 }
 0x15d   : > { %1036 = dma.done.wait (!%p927_p3), %s741_s9, 16  }
 0x15e   : > { %1038 = vsyncadd (!%p927_p3), %s741_s9, 4294967280  ;;  %s16_s17 = sadd.s32 1, %s1061_s17   ;;  %s1524_s12 = smov %s1045_s13 }
 0x15f   : > { %p13_p5 = scmp.ge.s32.totalorder %s16_s17, 6   ;;  %s1525_s13 = smov %s1049_s14 }
 0x160   : > { %s1526_s14 = smov %s1139_s25  ;;  %s1527_s15 = smov %s1057_s16 }
 0x161   : > { %s1528_s16 = smov %s1530_s20  ;;  %15 = sbr.rel (!%p13_p5) target bundleno = 4 (0x4), region = 77 }
 0x168   :  { %745 = vsyncpa [#allocation4], 1 }
 0x169   :  { %747 = vsyncpa [#allocation4 + $0x1], 1 }

</bundles_post_ra>
